<compile_context>
chip_gen: v7x
topology: tpu7x:2x2x1
jax: 0.10.0
libtpu: 0.0.40
codegen_flags: <defaults>
</compile_context>

<pallas_src>
import functools
from types import SimpleNamespace

import numpy as np
import jax
import jax.numpy as jnp
from jax.experimental import pallas as pl
from jax.experimental.pallas import tpu as pltpu


def _round_up(n, m):
    return ((n + m - 1) // m) * m


def _choose_group(n_planes, per_plane_bytes):
    """Planes per grid step: big enough to amortize step overhead, small enough for VMEM,
    >= 2 grid steps when possible (v7x megacore), and an exact divisor of n_planes."""
    cap = 3 * 1024 * 1024                       # per-step block budget (x2 buffers << scoped VMEM)
    g = max(1, min(n_planes, cap // max(per_plane_bytes, 1)))
    if n_planes >= 2:
        g = min(g, n_planes // 2)               # keep grid length >= 2 for the 2-TC chips
    g = max(1, g)
    while n_planes % g:
        g -= 1
    return g


# -----------------------------------------------------------------------------
# Kernel 1: clamped sigmoid + 3x3 max-pool NMS (CenterNet _sigmoid + _nms)
#   input block  = (G, H, W)  un-padded heatmap planes (native dtype, cast in-kernel)
#   output block = (G, H, Wp) lane-dense; columns >= W zeroed in-kernel
# -----------------------------------------------------------------------------
def _nms_kernel(hm_ref, out_ref, *, w_valid, out_dtype):
    x = hm_ref[...].astype(jnp.float32)                    # [G, H, W]
    # sigmoid with the divide on the EUP slot (approx reciprocal); consistent for p and its
    # rolled copies, so the exact-equality peak test below is unaffected.
    p = pl.reciprocal(1.0 + jnp.exp(-x), approx=True)
    p = jnp.clip(p, 1e-4, 1.0 - 1e-4)                      # torch.clamp(sigmoid, 1e-4, 1-1e-4)
    G, H, W = p.shape
    neg = jnp.float32(-1e30)                               # acts as -inf (p >= 1e-4)

    # --- separable 3x3 max pool: XLU rolls + iota border masks, no scratch ---
    cols = jax.lax.broadcasted_iota(jnp.int32, p.shape, dimension=2)
    left = jnp.where(cols == 0, neg, pltpu.roll(p, shift=1, axis=2))
    right = jnp.where(cols == w_valid - 1, neg, pltpu.roll(p, shift=W - 1, axis=2))
    rowmax = jnp.maximum(p, jnp.maximum(left, right))

    rows = jax.lax.broadcasted_iota(jnp.int32, p.shape, dimension=1)
    up = jnp.where(rows == 0, neg, pltpu.roll(rowmax, shift=1, axis=1))
    down = jnp.where(rows == H - 1, neg, pltpu.roll(rowmax, shift=H - 1, axis=1))
    hmax = jnp.maximum(rowmax, jnp.maximum(up, down))

    res = jnp.where(hmax == p, p, 0.0)                     # peak test in f32
    out_ref[:, :, pl.ds(0, w_valid)] = res.astype(out_dtype)
    wp = out_ref.shape[2]
    if wp != w_valid:                                      # static: zero padded lanes (top_k reads them)
        out_ref[:, :, pl.ds(w_valid, wp - w_valid)] = jnp.zeros((G, H, wp - w_valid), out_dtype)


def heat_nms(hm):
    """hm: [B, C, H, W] logits -> ([B*C, H, Wp] peak-NMS'd scores (pad cols = 0), Wp)."""
    B, C, H, W = hm.shape
    Wp = _round_up(W, 128)
    n_planes = B * C
    hm3 = hm.reshape(n_planes, H, W)                       # contiguous, free

    out_dtype = jnp.bfloat16 if hm.dtype == jnp.bfloat16 else jnp.float32
    per_plane = H * (W * jnp.dtype(hm.dtype).itemsize + Wp * jnp.dtype(out_dtype).itemsize)
    G = _choose_group(n_planes, per_plane)

    kern = functools.partial(_nms_kernel, w_valid=W, out_dtype=out_dtype)
    out = pl.pallas_call(
        kern,
        out_shape=jax.ShapeDtypeStruct((n_planes, H, Wp), out_dtype),
        grid=(n_planes // G,),
        in_specs=[pl.BlockSpec((G, H, W), lambda i: (i, 0, 0))],
        out_specs=pl.BlockSpec((G, H, Wp), lambda i: (i, 0, 0)),
        compiler_params=pltpu.CompilerParams(dimension_semantics=("parallel",)),
    )(hm3)
    return out, Wp


# -----------------------------------------------------------------------------
# Kernel 2: box decode + letterbox-inverse transform
#   inputs : full-dim (un-padded) blocks, no wrapper padding/concat:
#     xs,ys : [B, K]        reg2,wh2 : [B, 2*K]     pre2,trk2 : [B, 2*P]     prm : [B, 3]
#   outputs: lane-dense packed:
#     box : [B, 4*Kp] = x1 | y1 | x2 | y2     cts : [B, 2*Pp] = pre2cur_x | pre2cur_y
# -----------------------------------------------------------------------------
def _decode_kernel(xs_ref, ys_ref, reg_ref, wh_ref, pre_ref, trk_ref, prm_ref,
                   box_ref, cts_ref, *, k, p, kp, pp):
    box_ref[...] = jnp.zeros_like(box_ref)                 # deterministic padded lanes
    cts_ref[...] = jnp.zeros_like(cts_ref)

    prm = prm_ref[...]
    scale = prm[:, 0:1]            # down_ratio / ratio   (broadcasts over lanes)
    ox = prm[:, 1:2]               # dw / ratio
    oy = prm[:, 2:3]               # dh / ratio

    xs = xs_ref[...] + reg_ref[:, pl.ds(0, k)]
    ys = ys_ref[...] + reg_ref[:, pl.ds(k, k)]
    hw = wh_ref[:, pl.ds(0, k)] * 0.5
    hh = wh_ref[:, pl.ds(k, k)] * 0.5

    # ((c +- s/2) * down_ratio - d) / ratio  ==  (c +- s/2) * scale - offset
    box_ref[:, pl.ds(0 * kp, k)] = (xs - hw) * scale - ox
    box_ref[:, pl.ds(1 * kp, k)] = (ys - hh) * scale - oy
    box_ref[:, pl.ds(2 * kp, k)] = (xs + hw) * scale - ox
    box_ref[:, pl.ds(3 * kp, k)] = (ys + hh) * scale - oy

    pcx = pre_ref[:, pl.ds(0, p)]
    pcy = pre_ref[:, pl.ds(p, p)]
    trx = trk_ref[:, pl.ds(0, p)]
    tr_y = trk_ref[:, pl.ds(p, p)]
    cts_ref[:, pl.ds(0 * pp, p)] = (pcx + trx) * scale - ox
    cts_ref[:, pl.ds(1 * pp, p)] = (pcy + tr_y) * scale - oy


def decode_transform(xs0, ys0, reg2, wh2, pre2, trk2, prm):
    B, K = xs0.shape
    P = pre2.shape[1] // 2
    Kp = _round_up(K, 128)
    Pp = _round_up(P, 128)
    f32 = jnp.float32

    kern = functools.partial(_decode_kernel, k=K, p=P, kp=Kp, pp=Pp)
    box_packed, cts_packed = pl.pallas_call(
        kern,
        out_shape=(jax.ShapeDtypeStruct((B, 4 * Kp), f32),
                   jax.ShapeDtypeStruct((B, 2 * Pp), f32)),
        grid=(1,),
        in_specs=[pl.BlockSpec((B, K), lambda i: (0, 0)),
                  pl.BlockSpec((B, K), lambda i: (0, 0)),
                  pl.BlockSpec((B, 2 * K), lambda i: (0, 0)),
                  pl.BlockSpec((B, 2 * K), lambda i: (0, 0)),
                  pl.BlockSpec((B, 2 * P), lambda i: (0, 0)),
                  pl.BlockSpec((B, 2 * P), lambda i: (0, 0)),
                  pl.BlockSpec((B, 3), lambda i: (0, 0))],
        out_specs=(pl.BlockSpec((B, 4 * Kp), lambda i: (0, 0)),
                   pl.BlockSpec((B, 2 * Pp), lambda i: (0, 0))),
    )(xs0, ys0, reg2, wh2, pre2, trk2, prm)
    return box_packed, cts_packed, Kp, Pp


# -----------------------------------------------------------------------------
# PostProcess forward (glue around the two Pallas kernels)
# -----------------------------------------------------------------------------
class PostProcessPallas:
    def __init__(self, args, valid_ids):
        self.args = args
        self._valid_ids = valid_ids
        self._letterbox_cache = {}
        print('valid_ids: ', self._valid_ids)
        print('version: ', 'origin')

    def _letterbox_params(self, ts_np):
        """Per-batch (down_ratio/ratio, dw/ratio, dh/ratio) as numpy; cached per target_sizes."""
        key = tuple(int(v) for v in np.asarray(ts_np).reshape(-1))
        cached = self._letterbox_cache.get(key)
        if cached is not None:
            return cached
        height, width = self.args.input_h, self.args.input_w
        dr = float(self.args.down_ratio)
        scales, offxs, offys = [], [], []
        for shape in np.asarray(ts_np):
            ratio = min(float(height) / shape[0], float(width) / shape[1])
            new_shape = (round(shape[1] * ratio), round(shape[0] * ratio))
            dw = (width - new_shape[0]) / 2
            dh = (height - new_shape[1]) / 2
            inv_r = 1.0 / ratio
            scales.append(dr * inv_r)
            offxs.append(dw * inv_r)
            offys.append(dh * inv_r)
        out = np.stack([np.asarray(scales, np.float32),
                        np.asarray(offxs, np.float32),
                        np.asarray(offys, np.float32)], axis=1)     # [B, 3]
        self._letterbox_cache[key] = out
        return out

    def __call__(self, outputs, target_sizes, pre_cts, filter_score=True):
        args = self.args
        out_thresh = args.pre_thresh if filter_score else 0.0
        f32 = jnp.float32

        # take last decoder layer, drop 'boxes'
        output = {k: v[-1] for k, v in outputs.items() if k != 'boxes'}

        hm = output['hm']                                      # [B, C, H, W] (native dtype)
        B, C, H, W = hm.shape
        K = args.K

        # ---- letterbox params (host metadata; computed first -> no mid-pipeline sync gate) ----
        prm_np = self._letterbox_params(np.asarray(target_sizes))   # [B, 3] numpy
        prm = jnp.asarray(prm_np, f32)

        # ---- generic_decode ----
        heat, Wp = heat_nms(hm)                                # Pallas kernel 1: [B*C, H, Wp]
        flat = heat.reshape(B, C * H * Wp)                     # contiguous, free
        scores, inds = jax.lax.top_k(flat, K)                  # TODO(synk): top_k stays in XLA; a per-block partial top-K epilogue in the NMS kernel would shrink its input ~100x.
        hwp = H * Wp
        clses = inds // hwp
        rem = inds % hwp
        ys0 = rem // Wp
        xs0p = rem % Wp
        # padded lanes carry score 0; clamp keeps gathers/coords in range if ever selected
        xs0 = jnp.minimum(xs0p, W - 1)
        sp = ys0 * W + xs0                                     # un-padded flat spatial index

        # TODO(synk): this gather could be fused into the decode kernel via scalar-prefetched
        # `sp` indices (PrefetchScalarGridSpec); kept in XLA (no transpose copy needed now).
        def gather_feat(feat):                                 # feat [B, Cf, H, W] -> [B, Cf, K]
            cf = feat.shape[1]
            f = feat.reshape(B, cf, H * W)
            idx = jnp.broadcast_to(sp[:, None, :], (B, cf, K))
            return jnp.take_along_axis(f, idx, axis=2)

        reg2 = gather_feat(output['reg']).astype(f32).reshape(B, 2 * K)   # rx | ry
        wh2 = gather_feat(output['wh']).astype(f32).reshape(B, 2 * K)     # w  | h

        # TODO(synk): 'tracking' assumed already sampled at pre_cts by the model ([B, P, 2]),
        # matching TransCenter's pre2cur_cts = down_ratio * (pre_cts + tracking).
        tracking = output['tracking']                          # [B, P, 2]
        P = tracking.shape[1]
        pre2 = jnp.transpose(pre_cts.astype(f32), (0, 2, 1)).reshape(B, 2 * P)
        trk2 = jnp.transpose(tracking.astype(f32), (0, 2, 1)).reshape(B, 2 * P)

        # ---- generic_post_process (coordinate math) ----      Pallas kernel 2
        box_packed, cts_packed, Kp, Pp = decode_transform(
            xs0.astype(f32), ys0.astype(f32), reg2, wh2, pre2, trk2, prm)

        # single host sync / transfer for everything the host loop needs
        scores_np, clses_np, boxes_pk_np, cts_pk_np = jax.device_get(
            (scores, clses, box_packed, cts_packed))
        scores_np = np.asarray(scores_np, np.float32)
        clses_np = np.asarray(clses_np)
        boxes_np = np.transpose(np.asarray(boxes_pk_np).reshape(B, 4, Kp)[:, :, :K],
                                (0, 2, 1))                     # [B, K, 4]
        pre2cur_np = np.transpose(np.asarray(cts_pk_np).reshape(B, 2, Pp)[:, :, :P],
                                  (0, 2, 1))                   # [B, P, 2]

        # ---- build coco-style results (host-side, variable length) ----
        coco_results = []
        for b in range(B):
            bxs, scs, lbs = [], [], []
            for j in range(K):
                if scores_np[b, j] < out_thresh:   # scores are sorted -> same as 'break'
                    break
                bbox = boxes_np[b, j]
                if bbox[2] - bbox[0] < 1 or bbox[3] - bbox[1] < 1:
                    continue
                bxs.append(bbox)
                scs.append(float(scores_np[b, j]))
                cls_plus1 = int(clses_np[b, j]) + 1
                lbs.append(self._valid_ids[cls_plus1 - 1])
            if len(bxs) > 0:
                coco_results.append({
                    'scores': jnp.asarray(scs, jnp.float32),
                    'labels': jnp.asarray(lbs, jnp.int32),
                    'boxes': jnp.asarray(np.stack(bxs), jnp.float32),
                    'pre2cur_cts': jnp.asarray(pre2cur_np[b], jnp.float32),
                })
            else:
                coco_results.append({
                    'scores': jnp.zeros((0,), jnp.float32),
                    'labels': jnp.zeros((0,), jnp.int32),
                    'boxes': jnp.zeros((0, 4), jnp.float32),
                    'pre2cur_cts': jnp.zeros((0, 2), jnp.float32),
                })
        return coco_results


# -----------------------------------------------------------------------------
# Demo
# -----------------------------------------------------------------------------
if __name__ == "__main__":
    L, B, C, H, W = 2, 2, 2, 16, 16     # decoder layers, batch, classes, feature h/w
    K, P = 8, 4                         # top-K detections, num previous centers
    down_ratio = 4

    args = SimpleNamespace(
        K=K,
        pre_thresh=0.3,
        input_h=H * down_ratio,
        input_w=W * down_ratio,
        down_ratio=down_ratio,
    )
    valid_ids = [1, 2]

    key = jax.random.PRNGKey(0)
    k1, k2, k3, k4, k5, k6 = jax.random.split(key, 6)
    outputs = {
        'hm': jax.random.normal(k1, (L, B, C, H, W), jnp.float32) * 2.0,
        'reg': jax.random.uniform(k2, (L, B, 2, H, W), jnp.float32),
        'wh': jax.random.uniform(k3, (L, B, 2, H, W), jnp.float32) * 6.0 + 1.0,
        'tracking': jax.random.normal(k4, (L, B, P, 2), jnp.float32),
        'boxes': jax.random.normal(k5, (L, B, K, 4), jnp.float32),  # skipped (k != 'boxes')
    }
    pre_cts = jax.random.uniform(k6, (B, P, 2), jnp.float32) * (W - 1)
    target_sizes = np.asarray([[120, 160], [96, 128]], np.int32)   # host metadata (orig_h, orig_w)

    post = PostProcessPallas(args, valid_ids)
    results = post(outputs, target_sizes, pre_cts, filter_score=True)

    for r in results:
        jax.block_until_ready((r['scores'], r['labels'], r['boxes'], r['pre2cur_cts']))
    print("KERNEL_OK")
</pallas_src>

<mosaic_0001>
module attributes {stable_mosaic.version = 11 : i64} {
  func.func @_nms_kernel(%arg0: i32, %arg1: memref<2x16x16xf32, #tpu.memory_space<vmem>>, %arg2: memref<2x16x128xf32, #tpu.memory_space<vmem>>) attributes {dimension_semantics = [#tpu.dimension_semantics<parallel>], iteration_bounds = array<i64: 2>, scalar_prefetch = 0 : i64, scratch_operands = 0 : i64, tpu.core_type = #tpu.core_type<tc>, window_params = [{transform_indices = @transform_0, window_bounds = array<i64: 2, 16, 16>}, {transform_indices = @transform_1, window_bounds = array<i64: 2, 16, 128>}]} {
    %c0 = arith.constant 0 : index
    %c0_0 = arith.constant 0 : index
    %c0_1 = arith.constant 0 : index
    %0 = vector.load %arg1[%c0, %c0_0, %c0_1] : memref<2x16x16xf32, #tpu.memory_space<vmem>>, vector<2x16x16xf32>
    %cst = arith.constant 0.000000e+00 : f32
    %1 = vector.broadcast %cst : f32 to vector<2x16x16xf32>
    %2 = arith.subf %1, %0 : vector<2x16x16xf32>
    %3 = math.exp %2 : vector<2x16x16xf32>
    %cst_2 = arith.constant 1.000000e+00 : f32
    %4 = vector.broadcast %cst_2 : f32 to vector<2x16x16xf32>
    %5 = arith.addf %4, %3 : vector<2x16x16xf32>
    %6 = tpu.reciprocal %5 {approx = true} : vector<2x16x16xf32> -> vector<2x16x16xf32>
    %cst_3 = arith.constant 9.99999974E-5 : f32
    %cst_4 = arith.constant 0.999899983 : f32
    %7 = vector.broadcast %cst_3 : f32 to vector<2x16x16xf32>
    %8 = arith.maximumf %7, %6 : vector<2x16x16xf32>
    %9 = vector.broadcast %cst_4 : f32 to vector<2x16x16xf32>
    %10 = arith.minimumf %9, %8 : vector<2x16x16xf32>
    %11 = tpu.iota {dimensions = array<i32: 2>} : vector<2x16x16xi32>
    %c0_i32 = arith.constant 0 : i32
    %12 = vector.broadcast %c0_i32 : i32 to vector<2x16x16xi32>
    %13 = arith.cmpi eq, %11, %12 : vector<2x16x16xi32>
    %c1_i32 = arith.constant 1 : i32
    %14 = tpu.dynamic_rotate %10 by %c1_i32 dim 2 : vector<2x16x16xf32>, i32 -> vector<2x16x16xf32>
    %cst_5 = arith.constant -1.000000e+30 : f32
    %15 = vector.broadcast %cst_5 : f32 to vector<2x16x16xf32>
    %16 = arith.select %13, %15, %14 : vector<2x16x16xi1>, vector<2x16x16xf32>
    %c15_i32 = arith.constant 15 : i32
    %17 = vector.broadcast %c15_i32 : i32 to vector<2x16x16xi32>
    %18 = arith.cmpi eq, %11, %17 : vector<2x16x16xi32>
    %c15_i32_6 = arith.constant 15 : i32
    %19 = tpu.dynamic_rotate %10 by %c15_i32_6 dim 2 : vector<2x16x16xf32>, i32 -> vector<2x16x16xf32>
    %cst_7 = arith.constant -1.000000e+30 : f32
    %20 = vector.broadcast %cst_7 : f32 to vector<2x16x16xf32>
    %21 = arith.select %18, %20, %19 : vector<2x16x16xi1>, vector<2x16x16xf32>
    %22 = arith.maximumf %16, %21 : vector<2x16x16xf32>
    %23 = arith.maximumf %10, %22 : vector<2x16x16xf32>
    %24 = tpu.iota {dimensions = array<i32: 1>} : vector<2x16x16xi32>
    %c0_i32_8 = arith.constant 0 : i32
    %25 = vector.broadcast %c0_i32_8 : i32 to vector<2x16x16xi32>
    %26 = arith.cmpi eq, %24, %25 : vector<2x16x16xi32>
    %c1_i32_9 = arith.constant 1 : i32
    %27 = tpu.dynamic_rotate %23 by %c1_i32_9 dim 1 : vector<2x16x16xf32>, i32 -> vector<2x16x16xf32>
    %cst_10 = arith.constant -1.000000e+30 : f32
    %28 = vector.broadcast %cst_10 : f32 to vector<2x16x16xf32>
    %29 = arith.select %26, %28, %27 : vector<2x16x16xi1>, vector<2x16x16xf32>
    %c15_i32_11 = arith.constant 15 : i32
    %30 = vector.broadcast %c15_i32_11 : i32 to vector<2x16x16xi32>
    %31 = arith.cmpi eq, %24, %30 : vector<2x16x16xi32>
    %c15_i32_12 = arith.constant 15 : i32
    %32 = tpu.dynamic_rotate %23 by %c15_i32_12 dim 1 : vector<2x16x16xf32>, i32 -> vector<2x16x16xf32>
    %cst_13 = arith.constant -1.000000e+30 : f32
    %33 = vector.broadcast %cst_13 : f32 to vector<2x16x16xf32>
    %34 = arith.select %31, %33, %32 : vector<2x16x16xi1>, vector<2x16x16xf32>
    %35 = arith.maximumf %29, %34 : vector<2x16x16xf32>
    %36 = arith.maximumf %23, %35 : vector<2x16x16xf32>
    %37 = arith.cmpf oeq, %36, %10 : vector<2x16x16xf32>
    %cst_14 = arith.constant 0.000000e+00 : f32
    %38 = vector.broadcast %cst_14 : f32 to vector<2x16x16xf32>
    %39 = arith.select %37, %10, %38 : vector<2x16x16xi1>, vector<2x16x16xf32>
    %c0_15 = arith.constant 0 : index
    %c0_16 = arith.constant 0 : index
    %c0_17 = arith.constant 0 : index
    %40 = vector.load %arg2[%c0_15, %c0_16, %c0_17] : memref<2x16x128xf32, #tpu.memory_space<vmem>>, vector<2x16x16xf32>
    tpu.vector_store %arg2[%c0_15, %c0_16, %c0_17], %39 {strides = array<i32>} : memref<2x16x128xf32, #tpu.memory_space<vmem>>, vector<2x16x16xf32>,
    %cst_18 = arith.constant 0.000000e+00 : f32
    %41 = vector.broadcast %cst_18 : f32 to vector<2x16x112xf32>
    %c0_19 = arith.constant 0 : index
    %c0_20 = arith.constant 0 : index
    %c16 = arith.constant 16 : index
    %42 = vector.load %arg2[%c0_19, %c0_20, %c16] : memref<2x16x128xf32, #tpu.memory_space<vmem>>, vector<2x16x112xf32>
    tpu.vector_store %arg2[%c0_19, %c0_20, %c16], %41 {strides = array<i32>} : memref<2x16x128xf32, #tpu.memory_space<vmem>>, vector<2x16x112xf32>,
    return
  }
  func.func @transform_0(%arg0: i32) -> (i32, i32, i32) {
    %c0_i32 = arith.constant 0 : i32
    %c0_i32_0 = arith.constant 0 : i32
    %c0_i32_1 = arith.constant 0 : i32
    return %arg0, %c0_i32, %c0_i32_0 : i32, i32, i32
  }
  func.func @transform_1(%arg0: i32) -> (i32, i32, i32) {
    %c0_i32 = arith.constant 0 : i32
    %c0_i32_0 = arith.constant 0 : i32
    %c0_i32_1 = arith.constant 0 : i32
    return %arg0, %c0_i32, %c0_i32_0 : i32, i32, i32
  }
}

</mosaic_0001>

<bundles_post_ra>
// kernel: tpu_custom_call.1
= control target key start
LH: loop header
LB: loop body
LE: loop exit
PB: predicated region body
PF: predicated region fallthrough
CT: control target
= control target key end

     0   :  { %6 = vsyncpa [#allocation3], 0  ;;  %s831_s0 = inlined_call_operand.hbm [shape: f32[4,16,16], index: 0, kind: input, shape index: {}]   ;;  %s832_s1 = inlined_call_operand.hbm [shape: f32[4,16,128], index: 1, kind: output, shape index: {}]  }
   0x1   :  { %8 = vsyncpa [#allocation3 + $0x1], 0 }
   0x2   :  { %9 = vsyncpa [#allocation4], 0 }
   0x3   :  { %11 = vsyncpa [#allocation4 + $0x1], 0  ;;  %s597_s6 = smov 0   ;;  %s599_s7 = smov 0  }
   0x4   :  { %s601_s8 = smov 0   ;;  %s603_s9 = smov 0  }
   0x5 LB: > { %s618_s10 = sadd.s32 4294967295, %s575_s9   ;;  %s389_s11 = sadd.s32 4294967294, %s575_s9   ;;  %s575_s9 = sphi %s603_s9, %s845_s9   ;;  %s571_s8 = sphi %s601_s8, %s844_s8   ;;  %s567_s7 = sphi %s599_s7, %s843_s7   ;;  %s563_s6 = sphi %s597_s6, %s842_s6  }
   0x6   : > { %s622_s12 = sadd.s32 1, %s575_s9   ;;  %s24_s13 = sadd.s32 1, %s571_s8 }
   0x7   : > { %s21_s14 = ssub.s32 %s575_s9, %s622_s12  ;;  %p31_p0 = scmp.ne.s32.totalorder %s571_s8, %s567_s7 }
   0x8   : > { %p22_p1 = scmp.eq.s32.totalorder %s21_s14, 0  ;;  %p32_p2 = scmp.eq.s32.totalorder %s575_s9, 0 }
   0x9   : > { %p37_p3 = scmp.ne.s32.totalorder %s567_s7, %s563_s6  ;;  %p38_p4 = scmp.eq.s32.totalorder %s618_s10, 0 }
   0xa   : > { %s634_s15 = scalar_select %p22_p1, %s571_s8, %s24_s13  }
   0xb   : > { %p636_p5 = por %p32_p2, %p31_p0  ;;  %p640_p6 = por %p38_p4, %p37_p3 }
   0xc   : > { %p61_p7 = scmp.eq.s32.totalorder %s618_s10, 1  ;;  %p67_p8 = scmp.eq.s32.totalorder %s389_s11, 1 }
   0xd   : > { %p421_p10 = scmp.lt.s32.totalorder %s575_s9, 2  ;;  %s87_s20 = sand.u32 1, %s571_s8  }
   0xe   : > { %p647_p11 = por %p61_p7, %p31_p0  ;;  %p651_p12 = por %p67_p8, %p37_p3 }
   0xf   : > { %s406_s21 = sshll.u32 %s575_s9, 9  ;;  %s392_s22 = sshll.u32 %s87_s20, 5 }
  0x10   : > { %s836_s18 = scalar_select %p647_p11, 1, 0 }
  0x11   : > { %s837_s19 = scalar_select %p651_p12, 1, 0 }
  0x12   : > { %s660_s25 = scalar_lea.hbm %s831_s0, %s406_s21  ;;  %s91_s26 = scalar_lea.vmem [#allocation2], %s392_s22 }
  0x13   : > { %s99_s27 = sshll.u32 %s91_s26, 4  ;;  %p664_p13 = pnand %p421_p10, %p636_p5  ;;  %s668_s27 = int_to_ptr.vmem [resolvable:$true] %s99_s27 }
  0x14   : > { %s670_s29 = scalar_lea.sflag [#allocation3], %s87_s20  ;;  %s479_s30 = scalar_lea.hbm %s660_s25, 512 }
  0x15   : > { %p480_p0 = scmp.ne.s32.totalorder %s660_s25, %s479_s30  ;;  %p481_p1 = pneg %p664_p13 }
  0x16   : > { %s484_s4 = scalar_lea.hbm %s831_s0, 1024  ;;  %p485_p4 = scmp.lt.u32.totalorder %s660_s25, %s831_s0 }
  0x17   : > { %p482_p2 = pnand %p481_p1, %p480_p0  ;;  %p486_p5 = scmp.lt.u32.totalorder %s484_s4, %s479_s30 }
  0x18   : > { %p488_p8 = scmp.lt.u32.totalorder %s479_s30, %s660_s25 }
  0x19   : > { %p483_p3 = pneg %p482_p2  ;;  %p487_p7 = por %p486_p5, %p485_p4 }
  0x1b   : > { %p489_p10 = por %p488_p8, %p487_p7 }
  0x1d   : > { %p490_p9 = pnand %p489_p10, %p483_p3 }
  0x1f   : > { %493 = shalt.err (!%p490_p9)
}
  0x20   : > { %s494_s13 = scalar_lea.vmem %s668_s27, 512  ;;  %s577_s14 = smov [#allocation2]  }
  0x21   : > { %p495_p0 = scmp.ne.s32.totalorder %s668_s27, %s494_s13  ;;  %s499_s16 = sshll.u32 %s577_s14, 4  ;;  %s500_s16 = int_to_ptr.vmem [resolvable:$false] %s499_s16 }
  0x22   : > { %s501_s20 = scalar_lea.vmem %s500_s16, 1024  ;;  %p502_p11 = scmp.lt.s32.totalorder %s668_s27, %s500_s16 }
  0x23   : > { %p497_p2 = pnand %p495_p0, %p481_p1  ;;  %p503_p4 = scmp.lt.s32.totalorder %s501_s20, %s494_s13 }
  0x25   : > { %p498_p12 = pneg %p497_p2  ;;  %p504_p5 = por %p503_p4, %p502_p11 }
  0x27   : > { %p505_p7 = pnand %p504_p5, %p498_p12 }
  0x29   : > { %508 = shalt.err (!%p505_p7)
}
  0x2a   : > { %s578_s21 = smov 128   ;;  %s579_s22 = smov 8  }
  0x2b   : > { %416 = dma.hbm_to_vmem [thread:$0]  (!%p664_p13), %s660_s25, 512, %s668_s27, %s670_s29, %s578_s21, %s578_s21, %s579_s22  }
  0x2c   : > { %p396_p9 = scmp.ge.s32.totalorder %s575_s9, 1  ;;  %p107_p1 = scmp.lt.s32.totalorder %s575_s9, 3 }
  0x2e   : > { %p108_p3 = pnand %p396_p9, %p107_p1 }
  0x2f   : > { %s701_s23 = sand.u32 (!%p108_p3), 1, %s567_s7  }
  0x30   : > { %111 = sbr.rel (%p108_p3) target bundleno = 484 (0x1e4), region = 24  ;;  %s397_s24 = sshll.u32 (!%p108_p3), %s701_s23, 5 }
  0x31   : > { %s114_s26 = scalar_lea.sflag (!%p108_p3), [#allocation3], %s701_s23  ;;  %s117_s30 = scalar_lea.vmem (!%p108_p3), [#allocation2], %s397_s24 }
  0x37   : > { %554 = dma.done.wait (%p640_p6), %s114_s26, 512  }
  0x38   : > { %556 = vsyncadd (%p640_p6), %s114_s26, 4294966784  ;;  %v138_v0 = vld [vmem:[%s117_s30] sm:$0xff]  ;;  %v140_v1 = vld [vmem:[%s117_s30 + $0x10] sm:$0xff]  ;;  %s580_s17 = smov 16   ;;  %vm173_vm0 = vcmask 1047680   ;;  %s581_s25 = smov 113   ;;  %v170_v48 = vlaneseq }
  0x39   : > { %v139_v2 = vld [vmem:[%s117_s30 + $0x8] sm:$0xff]  ;;  %v142_v3 = vsub.f32 0.0, %v138_v0  ;;  %v144_v4 = vsub.f32 0.0, %v140_v1  ;;  %v141_v6 = vld [vmem:[%s117_s30 + $0x18] sm:$0xff]  ;;  %s582_s27 = smov 127   ;;  %vm292_vm7 = vcmask 130048  }
  0x3a   : > { %v143_v5 = vsub.f32 0.0, %v139_v2  ;;  %v145_v7 = vsub.f32 0.0, %v141_v6  ;;  %v171_v50 = vand.u32 127, %v170_v48  ;;  %v244_v53 = vshrl.u32 %v170_v48, 7  ;;  %s135_s28 = scalar_lea.vmem [#allocation5], %s397_s24  ;;  %s408_s29 = sshll.u32 %s618_s10, 9 }
  0x3b   : > { %v146_v8 = vmul.f32 1.442695, %v142_v3  ;;  %v150_v9 = vmul.f32 1.442695, %v144_v4  ;;  %s316_s2 = sshll.u32 %s135_s28, 4  ;;  %s779_s5 = scalar_lea.hbm %s832_s1, %s408_s29  ;;  %s781_s2 = int_to_ptr.vmem [resolvable:$true] %s316_s2 }
  0x3c   : > { %v148_v10 = vmul.f32 1.442695, %v143_v5  ;;  %v152_v11 = vmul.f32 1.442695, %v145_v7  ;;  %vm172_vm1 = vcmp.eq.s32.totalorder %v171_v50, 0  ;;  %vm218_vm2 = vcmp.eq.s32.totalorder %v171_v50, 15 }
  0x3d   : > { %463 = vpow2.f32 %v146_v8  ;;  %v245_v59 = vadd.s32 8, %v244_v53  ;;  %vm246_vm3 = vcmp.eq.s32.totalorder %v244_v53, 0  ;;  %vm252_vm4 = vcmp.lt.s32.totalorder %v244_v53, 1  ;;  %s302_s10 = scalar_lea.sflag [#allocation4], %s701_s23  ;;  %s509_s11 = scalar_lea.vmem %s781_s2, 512 }
  0x3e   : > { %465 = vpow2.f32 %v150_v9  ;;  %vm267_vm6 = vcmp.lt.s32.totalorder %v244_v53, 7  ;;  %p510_p6 = scmp.ne.s32.totalorder %s781_s2, %s509_s11  ;;  %p839_p11 = scmp.ne.s32.totalorder %s836_s18, 0 }
  0x3f   : > { %467 = vpow2.f32 %v148_v10  ;;  %vm262_vm5 = vcmp.eq.s32.totalorder %v245_v59, 15  ;;  %s584_s13 = smov [#allocation5]  }
  0x40   : > { %469 = vpow2.f32 %v152_v11  ;;  %p511_p12 = pnand %p510_p6, %p839_p11  ;;  %s513_s14 = sshll.u32 %s584_s13, 4  ;;  %s514_s14 = int_to_ptr.vmem [resolvable:$false] %s513_s14 }
  0x41   : > { %s515_s16 = scalar_lea.vmem %s514_s14, 1024  ;;  %p516_p8 = scmp.lt.s32.totalorder %s781_s2, %s514_s14 }
  0x42   : > { %p512_p13 = pneg %p511_p12  ;;  %p517_p10 = scmp.lt.s32.totalorder %s515_s16, %s509_s11 }
  0x44   : > { %p518_p0 = por %p517_p10, %p516_p8 }
  0x46   : > { %p519_p2 = pnand %p518_p0, %p512_p13 }
  0x47   : > { %v464_v12 = vpop.eup %463 }
  0x48   : > { %v466_v13 = vpop.eup %465  ;;  %v154_v14 = vadd.f32 1.0, %v464_v12 }
  0x49   : > { %v468_v15 = vpop.eup %467  ;;  %v156_v16 = vadd.f32 1.0, %v466_v13 }
  0x4a   : > { %v470_v17 = vpop.eup %469  ;;  %471 = vrcp.f32 %v154_v14  ;;  %v155_v18 = vadd.f32 1.0, %v468_v15 }
  0x4b   : > { %473 = vrcp.f32 %v156_v16  ;;  %v157_v19 = vadd.f32 1.0, %v470_v17 }
  0x4c   : > { %475 = vrcp.f32 %v155_v18 }
  0x4d   : > { %477 = vrcp.f32 %v157_v19 }
  0x54   : > { %v472_v20 = vpop.eup %471 }
  0x55   : > { %v474_v21 = vpop.eup %473  ;;  %v162_v22 = vmax.f32 %v472_v20, 0.0001 }
  0x56   : > { %v476_v23 = vpop.eup %475  ;;  %v164_v24 = vmax.f32 %v474_v21, 0.0001 }
  0x57   : > { %v478_v25 = vpop.eup %477  ;;  %v711_v26 = vmin.f32 %v162_v22, 0.9999  ;;  %v163_v27 = vmax.f32 %v476_v23, 0.0001 }
  0x58   : > { %v713_v28 = vmin.f32 %v164_v24, 0.9999  ;;  %v165_v29 = vmax.f32 %v478_v25, 0.0001 }
  0x59   : > { %174 = vrot.lane.b32.xlu0 %v711_v26, %s580_s17  ;;  %v716_v30 = vmin.f32 %v163_v27, 0.9999 }
  0x5a   : > { %180 = vrot.lane.b32.xlu1 %v713_v28, %s580_s17  ;;  %v719_v31 = vmin.f32 %v165_v29, 0.9999 }
  0x5d   : > { %177 = vrot.lane.b32.xlu0 %v716_v30, %s580_s17 }
  0x5e   : > { %183 = vrot.lane.b32.xlu1 %v719_v31, %s580_s17 }
  0xcb   : > { %v175_v32 = vpop.permute.xlu0 %174 }
  0xcc   : > { %v176_v33 = vsel %vm173_vm0, %v175_v32, %v711_v26  ;;  %v181_v34 = vpop.permute.xlu1 %180 }
  0xcd   : > { %186 = vrot.lane.b32.xlu0 %v176_v33, %s580_s17  ;;  %v182_v35 = vsel %vm173_vm0, %v181_v34, %v713_v28 }
  0xcf   : > { %v178_v36 = vpop.permute.xlu0 %177 }
  0xd0   : > { %v179_v37 = vsel %vm173_vm0, %v178_v36, %v716_v30  ;;  %v184_v38 = vpop.permute.xlu1 %183 }
  0xd1   : > { %190 = vrot.lane.b32.xlu0 %v182_v35, %s580_s17  ;;  %188 = vrot.lane.b32.xlu1 %v179_v37, %s580_s17  ;;  %v185_v39 = vsel %vm173_vm0, %v184_v38, %v719_v31 }
  0xd5   : > { %192 = vrot.lane.b32.xlu1 %v185_v39, %s580_s17 }
 0x13f   : > { %v187_v40 = vpop.permute.xlu0 %186 }
 0x140   : > { %v194_v41 = vsel %vm173_vm0, %v187_v40, %v711_v26 }
 0x141   : > { %202 = vrot.lane.b32.xlu0 %v194_v41, %s581_s25 }
 0x143   : > { %v189_v42 = vpop.permute.xlu1 %188  ;;  %v191_v43 = vpop.permute.xlu0 %190 }
 0x144   : > { %v195_v44 = vsel %vm173_vm0, %v189_v42, %v716_v30  ;;  %v196_v45 = vsel %vm173_vm0, %v191_v43, %v713_v28 }
 0x145   : > { %204 = vrot.lane.b32.xlu1 %v195_v44, %s581_s25  ;;  %206 = vrot.lane.b32.xlu0 %v196_v45, %s581_s25 }
 0x147   : > { %v193_v46 = vpop.permute.xlu1 %192 }
 0x148   : > { %v197_v47 = vsel %vm173_vm0, %v193_v46, %v719_v31 }
 0x149   : > { %208 = vrot.lane.b32.xlu1 %v197_v47, %s581_s25  ;;  %219 = vrot.lane.b32.xlu0 %v194_v41, %s582_s27 }
 0x14d   : > { %221 = vrot.lane.b32.xlu1 %v195_v44, %s582_s27  ;;  %223 = vrot.lane.b32.xlu0 %v196_v45, %s582_s27  ;;  %v583_v44 = vmov 0.0  }
 0x151   : > { %225 = vrot.lane.b32.xlu1 %v197_v47, %s582_s27 }
 0x1b3   : > { %v203_v49 = vpop.permute.xlu0 %202 }
 0x1b4   : > { %v214_v56 = vsel %vm172_vm1, -1e+30, %v203_v49 }
 0x1b7   : > { %v205_v51 = vpop.permute.xlu1 %204  ;;  %v207_v52 = vpop.permute.xlu0 %206 }
 0x1b8   : > { %v215_v62 = vsel %vm172_vm1, -1e+30, %v205_v51  ;;  %v216_v1 = vsel %vm172_vm1, -1e+30, %v207_v52 }
 0x1bb   : > { %v209_v54 = vpop.permute.xlu1 %208  ;;  %v220_v55 = vpop.permute.xlu0 %219 }
 0x1bc   : > { %v231_v57 = vsel %vm218_vm2, -1e+30, %v220_v55  ;;  %v217_v7 = vsel %vm172_vm1, -1e+30, %v209_v54 }
 0x1bd   : > { %v235_v58 = vmax.f32 %v214_v56, %v231_v57 }
 0x1bf   : > { %v222_v60 = vpop.permute.xlu1 %221  ;;  %v224_v61 = vpop.permute.xlu0 %223  ;;  %v239_v2 = vmax.f32 %v711_v26, %v235_v58 }
 0x1c0   : > { %v232_v63 = vsel %vm218_vm2, -1e+30, %v222_v60  ;;  %v233_v0 = vsel %vm218_vm2, -1e+30, %v224_v61 }
 0x1c1   : > { %v236_v3 = vmax.f32 %v215_v62, %v232_v63  ;;  %v237_v4 = vmax.f32 %v216_v1, %v233_v0  ;;  %v248_v9 = vrot.slane %v239_v2, 7  ;;  %v263_v10 = vrot.slane %v239_v2, 1 }
 0x1c3   : > { %v240_v5 = vmax.f32 %v716_v30, %v236_v3  ;;  %v226_v6 = vpop.permute.xlu1 %225  ;;  %v241_v13 = vmax.f32 %v713_v28, %v237_v4 }
 0x1c4   : > { %v234_v8 = vsel %vm218_vm2, -1e+30, %v226_v6 }
 0x1c5   : > { %v250_v11 = vrot.slane %v240_v5, 7  ;;  %v265_v12 = vrot.slane %v240_v5, 1  ;;  %v238_v14 = vmax.f32 %v217_v7, %v234_v8  ;;  %v249_v24 = vrot.slane %v241_v13, 7 }
 0x1c6   : > { %v264_v25 = vrot.slane %v241_v13, 1 }
 0x1c7   : > { %v253_v15 = vsel %vm252_vm4, %v248_v9, %v250_v11  ;;  %v255_v16 = vsel %vm252_vm4, %v250_v11, %v248_v9  ;;  %v268_v17 = vsel %vm267_vm6, %v263_v10, %v265_v12  ;;  %v270_v18 = vsel %vm267_vm6, %v265_v12, %v263_v10 }
 0x1c8   : > { %v257_v19 = vsel %vm246_vm3, -1e+30, %v255_v16  ;;  %v273_v20 = vsel %vm262_vm5, -1e+30, %v270_v18  ;;  %v242_v21 = vmax.f32 %v719_v31, %v238_v14 }
 0x1c9   : > { %v276_v22 = vmax.f32 %v257_v19, %v268_v17  ;;  %v277_v23 = vmax.f32 %v253_v15, %v273_v20 }
 0x1ca   : > { %v251_v27 = vrot.slane %v242_v21, 7  ;;  %v266_v29 = vrot.slane %v242_v21, 1 }
 0x1cb   : > { %v280_v32 = vmax.f32 %v239_v2, %v276_v22  ;;  %v281_v33 = vmax.f32 %v240_v5, %v277_v23 }
 0x1cc   : > { %v254_v34 = vsel %vm252_vm4, %v249_v24, %v251_v27  ;;  %v256_v35 = vsel %vm252_vm4, %v251_v27, %v249_v24  ;;  %v269_v36 = vsel %vm267_vm6, %v264_v25, %v266_v29  ;;  %v271_v37 = vsel %vm267_vm6, %v266_v29, %v264_v25 }
 0x1cd   : > { %vm284_vm8 = vcmp.eq.f32.partialorder %v280_v32, %v711_v26  ;;  %vm285_vm9 = vcmp.eq.f32.partialorder %v281_v33, %v716_v30  ;;  %v259_v38 = vsel %vm246_vm3, -1e+30, %v256_v35  ;;  %v275_v39 = vsel %vm262_vm5, -1e+30, %v271_v37 }
 0x1ce   : > { %v288_v40 = vsel %vm284_vm8, %v711_v26, 0.0  ;;  %v289_v41 = vsel %vm285_vm9, %v716_v30, 0.0  ;;  %v278_v42 = vmax.f32 %v259_v38, %v269_v36  ;;  %v279_v43 = vmax.f32 %v254_v34, %v275_v39 }
 0x1cf   : > { %293 = vst.msk [vmem:[%s135_s28] sm:$0xff] %vm292_vm7, %v288_v40  ;;  %294 = vst.msk [vmem:[%s135_s28 + $0x8] sm:$0xff] %vm292_vm7, %v289_v41 }
 0x1d0   : > { %298 = vst.msk [vmem:[%s135_s28 + $0x8] sm:$0xff] %vm173_vm0, %v583_v44  ;;  %297 = vst.msk [vmem:[%s135_s28] sm:$0xff] %vm173_vm0, %v583_v44  ;;  %v282_v26 = vmax.f32 %v241_v13, %v278_v42  ;;  %v283_v45 = vmax.f32 %v242_v21, %v279_v43 }
 0x1d2   : > { %vm286_vm10 = vcmp.eq.f32.partialorder %v282_v26, %v713_v28  ;;  %vm287_vm11 = vcmp.eq.f32.partialorder %v283_v45, %v719_v31 }
 0x1d3   : > { %v290_v30 = vsel %vm286_vm10, %v713_v28, 0.0  ;;  %v291_v46 = vsel %vm287_vm11, %v719_v31, 0.0 }
 0x1d4   : > { %295 = vst.msk [vmem:[%s135_s28 + $0x10] sm:$0xff] %vm292_vm7, %v290_v30  ;;  %296 = vst.msk [vmem:[%s135_s28 + $0x18] sm:$0xff] %vm292_vm7, %v291_v46 }
 0x1d5   : > { %300 = vst.msk [vmem:[%s135_s28 + $0x18] sm:$0xff] %vm173_vm0, %v583_v44  ;;  %299 = vst.msk [vmem:[%s135_s28 + $0x10] sm:$0xff] %vm173_vm0, %v583_v44 }
 0x1d6   : > { %522 = shalt.err (!%p519_p2)
}
 0x1d7   : > { %s523_s20 = scalar_lea.hbm %s779_s5, 512  ;;  %s527_s24 = scalar_lea.hbm %s832_s1, 1024 }
 0x1d8   : > { %p524_p4 = scmp.ne.s32.totalorder %s779_s5, %s523_s20  ;;  %p528_p9 = scmp.lt.u32.totalorder %s779_s5, %s832_s1 }
 0x1d9   : > { %p529_p1 = scmp.lt.u32.totalorder %s527_s24, %s523_s20  ;;  %p531_p6 = scmp.lt.u32.totalorder %s523_s20, %s779_s5 }
 0x1da   : > { %p525_p5 = pnand %p524_p4, %p839_p11 }
 0x1db   : > { %p530_p3 = por %p529_p1, %p528_p9 }
 0x1dc   : > { %p526_p7 = pneg %p525_p5 }
 0x1dd   : > { %p532_p12 = por %p531_p6, %p530_p3 }
 0x1df   : > { %p533_p13 = pnand %p532_p12, %p526_p7 }
 0x1e1   : > { %536 = shalt.err (!%p533_p13)
}
 0x1e2   : > { %s585_s17 = smov 128   ;;  %s586_s25 = smov 8  }
 0x1e3   : > { %411 = dma.vmem_to_hbm [thread:$0]  (%p839_p11), %s781_s2, 512, %s779_s5, %s302_s10, %s585_s17, %s585_s17, %s586_s25  }
 0x1e4 PF: > { %s331_s27 = sand.u32 1, %s563_s6   ;;  %p840_p8 = scmp.ne.s32.totalorder %s837_s19, 0 }
 0x1e5   : > { %p841_p10 = scmp.ge.s32.totalorder %s575_s9, 2  ;;  %s332_s28 = scalar_lea.sflag [#allocation4], %s331_s27 }
 0x1e7   : > { %p418_p0 = pnand %p841_p10, %p840_p8 }
 0x1e9   : > { %558 = dma.done.wait (!%p418_p0), %s332_s28, 512  }
 0x1ea   : > { %560 = vsyncadd (!%p418_p0), %s332_s28, 4294966784  ;;  %p14_p2 = scmp.ge.s32.totalorder %s622_s12, 4   ;;  %s842_s6 = smov %s567_s7 }
 0x1eb   : > { %s843_s7 = smov %s571_s8  ;;  %s844_s8 = smov %s634_s15 }
 0x1ec   : > { %s845_s9 = smov %s622_s12  ;;  %16 = sbr.rel (!%p14_p2) target bundleno = 5 (0x5), region = 69 }
 0x1f3   :  { %337 = vsyncpa [#allocation3], 1 }
 0x1f4   :  { %339 = vsyncpa [#allocation3 + $0x1], 1 }
 0x1f5   :  { %340 = vsyncpa [#allocation4], 1 }
 0x1f6   :  { %342 = vsyncpa [#allocation4 + $0x1], 1 }

</bundles_post_ra>
